<compile_context>
chip_gen: v7x
topology: tpu7x:2x2x1
jax: 0.10.0
libtpu: 0.0.40
codegen_flags: <defaults>
</compile_context>

<pallas_src>
import jax
import jax.numpy as jnp
from jax.experimental import pallas as pl
from jax.experimental.pallas import tpu as pltpu


# Total *live* pipelined VMEM we allow the kernel's buffers to occupy
# (x-in + out, double-buffered). 12 MiB keeps us under v5e's 16 MiB default
# scoped limit and far under v6e/v7x limits, while staying well past the
# ~1 MiB tile knee where the HBM roofline flattens.
_VMEM_LIVE_BUDGET = 12 * 1024 * 1024
_MEGACORE_MIN_STEPS = 8          # target minimum grid steps (v7x 2-core split)
_VMEM_LIMIT_BYTES = 32 * 1024 * 1024   # explicit scoped limit, safe on v5e/v6e/v7x


def _affine_kernel(gamma_ref, beta_ref, x_ref, o_ref):
    # gamma/beta: f32, either (1, c_tile, 1) (broadcast along lanes) or the
    # same block shape as x (pre-broadcast path for tiny spatial maps).
    # x/o: (1, c_tile, lane_tile) in the input dtype.
    x = x_ref[...].astype(jnp.float32)
    o_ref[...] = (gamma_ref[...] * x + beta_ref[...]).astype(o_ref.dtype)


def _pick_c_tile(C, itemsize):
    """Channel (sublane) tile: full C unless even a 128-lane tile would blow
    the live-VMEM budget; then a multiple of 8."""
    per_c = 128 * itemsize * 4          # in+out, double-buffered, at 128 lanes
    if C % 8 != 0 or C * per_c <= _VMEM_LIVE_BUDGET:
        return C
    return max(8, min(C, (_VMEM_LIVE_BUDGET // per_c) // 8 * 8))


def _pick_lane_tile(total, live_bytes_per_lane, min_grid_steps):
    """Lane tile: multiple of 128 within the live-VMEM budget (or the full
    extent when total < 128), capped so the grid has >= min_grid_steps steps
    along this axis when possible (megacore splittability)."""
    if total < 128:
        return total
    by_budget = _VMEM_LIVE_BUDGET // max(live_bytes_per_lane, 1)
    tile = max(128, min(total, by_budget) // 128 * 128)
    if min_grid_steps > 1:
        cap = max(128, (total // min_grid_steps) // 128 * 128)
        tile = min(tile, cap)
    return tile


def affine_forward(x_nchw, y, params):
    """x_nchw: (B, C, H, W); y: (B, cond_dim) or (cond_dim,)."""
    B, C, H, W = x_nchw.shape
    if y.ndim == 1:
        # mirrors the weight.unsqueeze(0) + expand(size) behaviour in PyTorch
        y = jnp.broadcast_to(y[None, :], (B, y.shape[0]))
    HW = H * W
    itemsize = x_nchw.dtype.itemsize

    # --- tiny conditioning MLPs, hoisted out of the kernel (plain XLA) ------
    yf = y.astype(jnp.float32)
    h_g = jnp.maximum(yf @ params["w1g"] + params["b1g"], 0.0)
    gamma = (h_g @ params["w2g"] + params["b2g"]).astype(jnp.float32)   # (B, C)
    h_b = jnp.maximum(yf @ params["w1b"] + params["b1b"], 0.0)
    beta = (h_b @ params["w2b"] + params["b2b"]).astype(jnp.float32)    # (B, C)

    # --- NCHW-native flattened view: (B, C, HW) ------------------------------
    x_flat = x_nchw.reshape(B, C, HW)               # free view, no transpose

    if HW >= 128:
        # Per-channel affine: gamma/beta (B, C, 1) broadcast along the lane axis.
        c_tile = _pick_c_tile(C, itemsize)
        n_c = pl.cdiv(C, c_tile)
        min_hw_grid = -(-_MEGACORE_MIN_STEPS // max(B * n_c, 1))
        hw_tile = _pick_lane_tile(HW, c_tile * itemsize * 4, min_hw_grid)
        n_lane = pl.cdiv(HW, hw_tile)

        g_in = gamma.reshape(B, C, 1)
        b_in = beta.reshape(B, C, 1)
        gb_spec = pl.BlockSpec((1, c_tile, 1), lambda b, c, s: (b, c, 0))
        x_spec = pl.BlockSpec((1, c_tile, hw_tile), lambda b, c, s: (b, c, s))
        grid = (B, n_c, n_lane)
        flat_shape = (B, C, HW)
    else:
        # Tiny spatial maps: fold C*HW onto the lane axis so stores stay
        # lane-dense; gamma/beta are pre-broadcast in the wrapper (tiny arrays).
        N = C * HW
        g_in = jnp.broadcast_to(gamma[:, :, None], (B, C, HW)).reshape(B, 1, N)
        b_in = jnp.broadcast_to(beta[:, :, None], (B, C, HW)).reshape(B, 1, N)
        x_flat = x_flat.reshape(B, 1, N)
        min_grid = -(-_MEGACORE_MIN_STEPS // max(B, 1))
        # live bytes per lane: x in+out (itemsize each) + gamma/beta (f32 each),
        # all double-buffered.
        lane_tile = _pick_lane_tile(N, (2 * itemsize + 2 * 4) * 2, min_grid)
        n_lane = pl.cdiv(N, lane_tile)

        gb_spec = pl.BlockSpec((1, 1, lane_tile), lambda b, c, s: (b, 0, s))
        x_spec = pl.BlockSpec((1, 1, lane_tile), lambda b, c, s: (b, 0, s))
        grid = (B, 1, n_lane)
        flat_shape = (B, 1, N)

    out_flat = pl.pallas_call(
        _affine_kernel,
        out_shape=jax.ShapeDtypeStruct(flat_shape, x_nchw.dtype),
        grid=grid,
        in_specs=[gb_spec, gb_spec, x_spec],
        out_specs=x_spec,
        compiler_params=pltpu.CompilerParams(
            dimension_semantics=("parallel", "parallel", "parallel"),
            vmem_limit_bytes=_VMEM_LIMIT_BYTES),
    )(g_in, b_in, x_flat)

    return out_flat.reshape(B, C, H, W)


def init_affine_params(key, cond_dim, num_features):
    """Deterministic parameter init.

    linear1 (both branches): random (stand-in for PyTorch default init).
    linear2: exactly as Affine._initialize -> gamma: W=0, b=1; beta: W=0, b=0.
    Weights stored already transposed to (in, out) for y @ W + b.
    """
    k1, k2, k3, k4 = jax.random.split(key, 4)
    s1 = 1.0 / jnp.sqrt(cond_dim)
    return {
        "w1g": jax.random.uniform(k1, (cond_dim, num_features),
                                  jnp.float32, -s1, s1),
        "b1g": jax.random.uniform(k2, (1, num_features), jnp.float32, -s1, s1),
        "w2g": jnp.zeros((num_features, num_features), jnp.float32),
        "b2g": jnp.ones((1, num_features), jnp.float32),
        "w1b": jax.random.uniform(k3, (cond_dim, num_features),
                                  jnp.float32, -s1, s1),
        "b1b": jax.random.uniform(k4, (1, num_features), jnp.float32, -s1, s1),
        "w2b": jnp.zeros((num_features, num_features), jnp.float32),
        "b2b": jnp.zeros((1, num_features), jnp.float32),
    }


def affine_reference(x_nchw, y, params):
    """Pure-JAX reference matching the PyTorch forward."""
    if y.ndim == 1:
        y = y[None, :]
    h_g = jnp.maximum(y @ params["w1g"] + params["b1g"], 0.0)
    gamma = h_g @ params["w2g"] + params["b2g"]
    h_b = jnp.maximum(y @ params["w1b"] + params["b1b"], 0.0)
    beta = h_b @ params["w2b"] + params["b2b"]
    return gamma[:, :, None, None] * x_nchw + beta[:, :, None, None]


if __name__ == "__main__":
    key = jax.random.PRNGKey(0)
    kx1, kx2, ky, kp = jax.random.split(key, 4)

    # --- case 1: HW >= 128 path (lane-dense per-channel broadcast) ----------
    B, C, H, W = 2, 4, 16, 16
    cond_dim = 32
    x1 = jax.random.normal(kx1, (B, C, H, W), jnp.float32)
    y1 = jax.random.normal(ky, (B, cond_dim), jnp.float32)
    p1 = init_affine_params(kp, cond_dim, C)

    out1 = jax.block_until_ready(affine_forward(x1, y1, p1))
    ref1 = affine_reference(x1, y1, p1)
    assert out1.shape == (B, C, H, W)
    assert jnp.allclose(out1, ref1, atol=1e-5, rtol=1e-5)

    # --- case 2: HW < 128 path (channels folded onto the lane axis) ---------
    B2, C2, H2, W2 = 2, 8, 8, 8
    x2 = jax.random.normal(kx2, (B2, C2, H2, W2), jnp.float32)
    p2 = init_affine_params(kp, cond_dim, C2)

    out2 = jax.block_until_ready(affine_forward(x2, y1, p2))
    ref2 = affine_reference(x2, y1, p2)
    assert out2.shape == (B2, C2, H2, W2)
    assert jnp.allclose(out2, ref2, atol=1e-5, rtol=1e-5)

    print("KERNEL_OK")
</pallas_src>

<mosaic_0001>
module attributes {stable_mosaic.version = 11 : i64} {
  func.func @_affine_kernel(%arg0: i32, %arg1: i32, %arg2: i32, %arg3: memref<1x4x1xf32, #tpu.memory_space<vmem>>, %arg4: memref<1x4x1xf32, #tpu.memory_space<vmem>>, %arg5: memref<1x4x128xf32, #tpu.memory_space<vmem>>, %arg6: memref<1x4x128xf32, #tpu.memory_space<vmem>>) attributes {dimension_semantics = [#tpu.dimension_semantics<parallel>, #tpu.dimension_semantics<parallel>, #tpu.dimension_semantics<parallel>], iteration_bounds = array<i64: 2, 1, 2>, scalar_prefetch = 0 : i64, scratch_operands = 0 : i64, tpu.core_type = #tpu.core_type<tc>, window_params = [{transform_indices = @transform_0, window_bounds = array<i64: 1, 4, 1>}, {transform_indices = @transform_1, window_bounds = array<i64: 1, 4, 1>}, {transform_indices = @transform_2, window_bounds = array<i64: 1, 4, 128>}, {transform_indices = @transform_3, window_bounds = array<i64: 1, 4, 128>}]} {
    %c0 = arith.constant 0 : index
    %c0_0 = arith.constant 0 : index
    %c0_1 = arith.constant 0 : index
    %0 = vector.load %arg5[%c0, %c0_0, %c0_1] : memref<1x4x128xf32, #tpu.memory_space<vmem>>, vector<1x4x128xf32>
    %c0_2 = arith.constant 0 : index
    %c0_3 = arith.constant 0 : index
    %c0_4 = arith.constant 0 : index
    %1 = vector.load %arg3[%c0_2, %c0_3, %c0_4] : memref<1x4x1xf32, #tpu.memory_space<vmem>>, vector<1x4x1xf32>
    %2 = vector.broadcast %1 : vector<1x4x1xf32> to vector<1x4x128xf32>
    %3 = arith.mulf %2, %0 : vector<1x4x128xf32>
    %c0_5 = arith.constant 0 : index
    %c0_6 = arith.constant 0 : index
    %c0_7 = arith.constant 0 : index
    %4 = vector.load %arg4[%c0_5, %c0_6, %c0_7] : memref<1x4x1xf32, #tpu.memory_space<vmem>>, vector<1x4x1xf32>
    %5 = vector.broadcast %4 : vector<1x4x1xf32> to vector<1x4x128xf32>
    %6 = arith.addf %3, %5 : vector<1x4x128xf32>
    %c0_8 = arith.constant 0 : index
    %c0_9 = arith.constant 0 : index
    %c0_10 = arith.constant 0 : index
    %7 = vector.load %arg6[%c0_8, %c0_9, %c0_10] : memref<1x4x128xf32, #tpu.memory_space<vmem>>, vector<1x4x128xf32>
    tpu.vector_store %arg6[%c0_8, %c0_9, %c0_10], %6 {strides = array<i32>} : memref<1x4x128xf32, #tpu.memory_space<vmem>>, vector<1x4x128xf32>,
    return
  }
  func.func @transform_0(%arg0: i32, %arg1: i32, %arg2: i32) -> (i32, i32, i32) {
    %c0_i32 = arith.constant 0 : i32
    %c0_i32_0 = arith.constant 0 : i32
    return %arg0, %arg1, %c0_i32 : i32, i32, i32
  }
  func.func @transform_1(%arg0: i32, %arg1: i32, %arg2: i32) -> (i32, i32, i32) {
    %c0_i32 = arith.constant 0 : i32
    %c0_i32_0 = arith.constant 0 : i32
    return %arg0, %arg1, %c0_i32 : i32, i32, i32
  }
  func.func @transform_2(%arg0: i32, %arg1: i32, %arg2: i32) -> (i32, i32, i32) {
    %c0_i32 = arith.constant 0 : i32
    return %arg0, %arg1, %arg2 : i32, i32, i32
  }
  func.func @transform_3(%arg0: i32, %arg1: i32, %arg2: i32) -> (i32, i32, i32) {
    %c0_i32 = arith.constant 0 : i32
    return %arg0, %arg1, %arg2 : i32, i32, i32
  }
}

</mosaic_0001>

<bundles_post_ra>
// kernel: tpu_custom_call.1
= control target key start
LH: loop header
LB: loop body
LE: loop exit
PB: predicated region body
PF: predicated region fallthrough
CT: control target
= control target key end

     0   :  { %s775_s0 = inlined_call_operand.vmem [shape: f32[2,4,1], index: 0, kind: input, shape index: {}]   ;;  %s776_s1 = inlined_call_operand.vmem [shape: f32[2,4,1], index: 1, kind: input, shape index: {}]   ;;  %s777_s2 = inlined_call_operand.vmem [shape: f32[2,4,256], index: 2, kind: input, shape index: {}]   ;;  %s778_s3 = inlined_call_operand.hbm [shape: f32[2,4,256], index: 3, kind: output, shape index: {}]  }
   0x1   :  { %781 = sst [smem:[#allocation7_spill]] %s775_s0 }
   0x2   :  { %8 = vsyncpa [#allocation3], 0 }
   0x3   :  { %10 = vsyncpa [#allocation3 + $0x1], 0  ;;  %s632_s12 = smov 0   ;;  %s634_s13 = smov 0  }
   0x4   :  { %s636_s14 = smov 0   ;;  %s638_s15 = smov 0  }
   0x5   :  { %s640_s16 = smov 0   ;;  %s642_s17 = smov 0  }
   0x6   :  { %s644_s18 = smov 0   ;;  %s646_s19 = smov 0  }
   0x7 LB: > { %s426_s20 = sadd.s32 4294967295, %s608_s19   ;;  %s427_s21 = sadd.s32 4294967294, %s608_s19   ;;  %s608_s19 = sphi %s646_s19, %s16_s19   ;;  %s604_s18 = sphi %s644_s18, %s795_s18   ;;  %s600_s17 = sphi %s642_s17, %s794_s17   ;;  %s596_s16 = sphi %s640_s16, %s793_s16   ;;  %s592_s15 = sphi %s638_s15, %s792_s15   ;;  %s588_s14 = sphi %s636_s14, %s791_s14   ;;  %s584_s13 = sphi %s634_s13, %s790_s13   ;;  %s580_s12 = sphi %s632_s12, %s789_s12  }
   0x8   : > { %s28_s22 = sadd.s32 1, %s600_s17  ;;  %s35_s23 = sadd.s32 1, %s604_s18 }
   0x9   : > { %p29_p0 = scmp.ge.s32.totalorder %s28_s22, 2  ;;  %p142_p1 = scmp.ne.s32.totalorder %s588_s14, %s584_s13 }
   0xa   : > { %p143_p2 = scmp.eq.s32.totalorder %s426_s20, 3  ;;  %p148_p5 = scmp.ne.s32.totalorder %s584_s13, %s580_s12 }
   0xb   : > { %s797_s22 = smov (%p29_p0, %s28_s22), 0  ;;  %s799_s23 = smov (!%p29_p0, %s35_s23), %s604_s18 }
   0xc   : > { %782 = sst [smem:[#allocation5_spill]] %s797_s22  ;;  %s128_s24 = ssub.s32 %s600_s17, %s797_s22 }
   0xd   : > { %p683_p3 = por %p143_p2, %p142_p1  ;;  %p37_p4 = scmp.ge.s32.totalorder %s799_s23, 2 }
   0xe   : > { %p149_p6 = scmp.eq.s32.totalorder %s427_s21, 3  ;;  %p430_p7 = scmp.ge.s32.totalorder %s608_s19, 1 }
   0xf   : > { %s801_s23 = smov (%p37_p4, %s799_s23), 0  ;;  %p202_p9 = scmp.lt.s32.totalorder %s608_s19, 5 }
  0x10   : > { %784 = sst [smem:[#allocation6_spill]] %s801_s23  ;;  %p692_p8 = por %p149_p6, %p148_p5 }
  0x11   : > { %s125_s27 = ssub.s32 %s604_s18, %s801_s23  ;;  %s132_s28 = sadd.s32 1, %s588_s14 }
  0x12   : > { %s129_s29 = sor.u32 %s128_s24, %s125_s27  ;;  %p203_p10 = pnand %p430_p7, %p202_p9 }
  0x13   : > { %p130_p11 = scmp.eq.s32.totalorder %s129_s29, 0  ;;  %p247_p12 = scmp.lt.s32.totalorder (!%p203_p10), %s596_s16, 1  ;;  %v610_v0 = vmov (!%p203_p10), 0  }
  0x14   : > { %206 = sbr.rel (%p203_p10) target bundleno = 180 (0xb4), region = 32  ;;  %513 = vset.pattern.permute.xlu0 (!%p203_p10), %v610_v0  ;;  %s786_s0 = sld [smem:[#allocation7_spill]] (!%p203_p10) }
  0x15   : > { %s701_s30 = scalar_select %p130_p11, %s588_s14, %s132_s28  }
  0x16   : > { %p265_p13 = scmp.lt.s32.totalorder (!%p203_p10), %s592_s15, 1  ;;  %s244_s27 = sand.u32 (!%p203_p10), 1, %s584_s13  }
  0x17   : > { %s431_s29 = sshll.u32 (!%p203_p10), %s244_s27, 2  ;;  %s437_s23 = sshll.u32 (!%p203_p10), %s596_s16, 1 }
  0x1b   : > { %s248_s4 = scalar_select %p247_p12, %s596_s16, 1 }
  0x1c   : > { %s266_s20 = scalar_select %p265_p13, %s592_s15, 1 }
  0x1d   : > { %s432_s5 = sshll.u32 %s248_s4, 2  ;;  %s434_s21 = sshll.u32 %s248_s4, 1 }
  0x1e   : > { %s253_s8 = scalar_lea.vmem %s786_s0, %s432_s5  ;;  %s260_s11 = scalar_lea.vmem %s776_s1, %s432_s5 }
  0x1f   : > { %v274_v1 = vld [vmem:[%s253_s8] sm:$0xf]  ;;  %s270_s24 = sadd.s32 %s434_s21, %s266_s20  ;;  %s303_s0 = sadd.s32 %s592_s15, %s437_s23 }
  0x20   : > { %277 = vperm.xlu0 %513, %v274_v1   ;;  %v281_v2 = vld [vmem:[%s260_s11] sm:$0xf]  ;;  %s435_s28 = sshll.u32 %s270_s24, 2  ;;  %s438_s5 = sshll.u32 %s303_s0, 6 }
  0x21   : > { %s272_s7 = scalar_lea.vmem %s777_s2, %s435_s28  ;;  %s246_s8 = scalar_lea.vmem [#allocation2], %s431_s29 }
  0x22   : > { %v273_v3 = vld [vmem:[%s272_s7] sm:$0xf]  ;;  %s307_s9 = sshll.u32 %s246_s8, 4  ;;  %s722_s11 = scalar_lea.hbm %s778_s3, %s438_s5  ;;  %s724_s9 = int_to_ptr.vmem [resolvable:$true] %s307_s9 }
  0x23   : > { %s290_s15 = scalar_lea.sflag [#allocation3], %s244_s27  ;;  %s514_s16 = scalar_lea.vmem %s724_s9, 64 }
  0x24   : > { %284 = vperm.xlu0 %513, %v281_v2   ;;  %p515_p0 = scmp.ne.s32.totalorder %s724_s9, %s514_s16  ;;  %s611_s0 = smov [#allocation2]  }
  0x25   : > { %s518_s22 = sshll.u32 %s611_s0, 4  ;;  %s519_s22 = int_to_ptr.vmem [resolvable:$false] %s518_s22 }
  0x26   : > { %p516_p1 = pnand %p515_p0, %p683_p3  ;;  %s520_s23 = scalar_lea.vmem %s519_s22, 128 }
  0x27   : > { %p521_p4 = scmp.lt.s32.totalorder %s724_s9, %s519_s22  ;;  %p522_p5 = scmp.lt.s32.totalorder %s520_s23, %s514_s16 }
  0x28   : > { %p517_p2 = pneg %p516_p1 }
  0x29   : > { %p523_p6 = por %p522_p5, %p521_p4 }
  0x2b   : > { %p524_p7 = pnand %p523_p6, %p517_p2 }
  0x9f   : > { %v278_v4 = vpop.permute.xlu0 %277 }
  0xa0   : > { %v280_v5 = vmul.f32 %v278_v4, %v273_v3 }
  0xa3   : > { %v285_v6 = vpop.permute.xlu0 %284 }
  0xa4   : > { %v287_v7 = vadd.f32 %v285_v6, %v280_v5 }
  0xa6   : > { %288 = vst [vmem:[%s246_s8] sm:$0xf] %v287_v7 }
  0xa7   : > { %527 = shalt.err (!%p524_p7)
}
  0xa8   : > { %s528_s20 = scalar_lea.hbm %s722_s11, 64  ;;  %s532_s27 = scalar_lea.hbm %s778_s3, 256 }
  0xa9   : > { %p529_p9 = scmp.ne.s32.totalorder %s722_s11, %s528_s20  ;;  %p533_p12 = scmp.lt.u32.totalorder %s722_s11, %s778_s3 }
  0xaa   : > { %p534_p13 = scmp.lt.u32.totalorder %s532_s27, %s528_s20  ;;  %p536_p1 = scmp.lt.u32.totalorder %s528_s20, %s722_s11 }
  0xab   : > { %p530_p10 = pnand %p529_p9, %p683_p3 }
  0xac   : > { %p535_p0 = por %p534_p13, %p533_p12 }
  0xad   : > { %p531_p11 = pneg %p530_p10 }
  0xae   : > { %p537_p2 = por %p536_p1, %p535_p0 }
  0xb0   : > { %p538_p4 = pnand %p537_p2, %p531_p11 }
  0xb2   : > { %541 = shalt.err (!%p538_p4)
}
  0xb3   : > { %441 = dma.vmem_to_hbm [thread:$0]  (%p683_p3), %s724_s9, 64, %s722_s11, %s290_s15  }
  0xb4 PF: > { %p447_p5 = scmp.ge.s32.totalorder %s608_s19, 2  ;;  %s319_s6 = sand.u32 1, %s580_s12  }
  0xb5   : > { %s320_s7 = scalar_lea.sflag [#allocation3], %s319_s6 }
  0xb6   : > { %p444_p6 = pnand %p447_p5, %p692_p8 }
  0xb8   : > { %575 = dma.done.wait (!%p444_p6), %s320_s7, 64  }
  0xb9   : > { %577 = vsyncadd (!%p444_p6), %s320_s7, 4294967232  ;;  %s16_s19 = sadd.s32 1, %s608_s19   ;;  %s787_s25 = sld [smem:[#allocation5_spill]] }
  0xba   : > { %p13_p7 = scmp.ge.s32.totalorder %s16_s19, 6   ;;  %s788_s5 = sld [smem:[#allocation6_spill]] }
  0xbb   : > { %s789_s12 = smov %s584_s13  ;;  %s790_s13 = smov %s588_s14 }
  0xbc   : > { %s791_s14 = smov %s701_s30  ;;  %s792_s15 = smov %s600_s17 }
  0xbd   : > { %s793_s16 = smov %s604_s18  ;;  %15 = sbr.rel (!%p13_p7) target bundleno = 7 (0x7), region = 73 }
  0xbf   : > { %s794_s17 = smov %s787_s25 }
  0xc0   : > { %s795_s18 = smov %s788_s5 }
  0xc4   :  { %325 = vsyncpa [#allocation3], 1 }
  0xc5   :  { %327 = vsyncpa [#allocation3 + $0x1], 1 }

</bundles_post_ra>
